<compile_context>
chip_gen: v5e
topology: v5e:2x2
jax: 0.10.0
libtpu: 0.0.40
codegen_flags: <defaults>
</compile_context>

<pallas_src>
import math

import jax
import jax.numpy as jnp
from jax.experimental import pallas as pl
from jax.experimental.pallas import tpu as pltpu

EPS = 1e-5

# x arrays at or below this size take the single-resident-block fast path
# (saves one full HBM read of x vs. the two-pass scheme). Conservative so the
# whole-array in/out blocks stay well under every generation's scoped-VMEM
# default (16 MiB on v5e).
_FAST_PATH_BYTES = 2 * 1024 * 1024
# Per-tile byte budget for the streaming path; with input + output tiles each
# double-buffered this is <= ~4 MiB of VMEM.
_TILE_BYTE_BUDGET = 1 * 1024 * 1024


# --------------------------------------------------------------------------
# Kernels
# --------------------------------------------------------------------------
def _bn_single_block_kernel(x_ref, gamma_ref, beta_ref, o_ref):
    """Whole (N, C) array resident in VMEM: one read of x, one write of y."""
    x = x_ref[...].astype(jnp.float32)
    n = x.shape[0]
    mean = jnp.sum(x, axis=0, keepdims=True) * (1.0 / n)        # (1, C)
    xc = x - mean
    var = jnp.sum(xc * xc, axis=0, keepdims=True) * (1.0 / n)   # biased var
    # Fold per-channel math into one scale/bias: per-element work = mul + add.
    scale = gamma_ref[...].astype(jnp.float32) * jax.lax.rsqrt(var + EPS)
    bias = beta_ref[...].astype(jnp.float32) - mean * scale
    o_ref[...] = (x * scale + bias).astype(o_ref.dtype)


def _bn_stats_kernel(x_ref, sum_ref, sq_ref):
    """Pass 1: accumulate per-lane sum / sum-of-squares over row tiles."""
    @pl.when(pl.program_id(0) == 0)
    def _init():
        sum_ref[...] = jnp.zeros_like(sum_ref)
        sq_ref[...] = jnp.zeros_like(sq_ref)

    x = x_ref[...].astype(jnp.float32)      # upcast in-register only
    sum_ref[...] += jnp.sum(x, axis=0, keepdims=True)
    sq_ref[...] += jnp.sum(x * x, axis=0, keepdims=True)


def _bn_apply_kernel(x_ref, scale_ref, bias_ref, o_ref):
    """Pass 2: y = x * scale + bias with precomputed per-lane scale/bias."""
    x = x_ref[...].astype(jnp.float32)
    o_ref[...] = (x * scale_ref[...] + bias_ref[...]).astype(o_ref.dtype)


# --------------------------------------------------------------------------
# Layout helpers
# --------------------------------------------------------------------------
def _choose_fold(n_rows, channels):
    """Fold F consecutive rows into the lane axis so the last dim is a
    (large) multiple of 128. Returns (F, LANE = F * channels)."""
    if channels % 128 == 0:
        return 1, channels
    f = 128 // math.gcd(channels, 128)
    if n_rows % f != 0:
        return 1, channels        # cannot fold cleanly; lane dim = channels
    while f * channels < 512 and n_rows % (2 * f) == 0:
        f *= 2
    return f, f * channels


def _pick_rows_tile(rows, lane, itemsize):
    t = (_TILE_BYTE_BUDGET // max(1, lane * itemsize)) // 8 * 8
    t = max(8, min(t, 1024))
    r_up = ((rows + 7) // 8) * 8
    return min(t, r_up)


# --------------------------------------------------------------------------
# Wrapper
# --------------------------------------------------------------------------
def batchnorm1d(x, gamma, beta, *, force_tiled=False):
    """x: (B, L, C) channels-last. gamma, beta: (C,). Returns (B, L, C)."""
    B, L, C = x.shape
    N = B * L
    xf = x.reshape(N, C)
    itemsize = jnp.dtype(x.dtype).itemsize

    # ---- Fast path: whole activation resident in VMEM (1 read + 1 write) ----
    if not force_tiled and N * C * itemsize <= _FAST_PATH_BYTES:
        out = pl.pallas_call(
            _bn_single_block_kernel,
            out_shape=jax.ShapeDtypeStruct((N, C), x.dtype),
            grid=(1,),
            in_specs=[
                pl.BlockSpec((N, C), lambda i: (0, 0)),
                pl.BlockSpec((1, C), lambda i: (0, 0)),
                pl.BlockSpec((1, C), lambda i: (0, 0)),
            ],
            out_specs=pl.BlockSpec((N, C), lambda i: (0, 0)),
            compiler_params=pltpu.CompilerParams(
                dimension_semantics=("arbitrary",)),
        )(xf, gamma.reshape(1, C), beta.reshape(1, C))
        return out.reshape(B, L, C)

    # ---- Tiled two-pass streaming path ----
    F, LANE = _choose_fold(N, C)
    R = (N * C) // LANE                      # folded row count (= N // F)
    xr = xf.reshape(R, LANE)

    rows_tile = _pick_rows_tile(R, LANE, itemsize)
    R_pad = ((R + rows_tile - 1) // rows_tile) * rows_tile
    if R_pad != R:
        # Zero rows contribute nothing to sum/sumsq; the true divisor N is
        # used in the finalize, and padded output rows are sliced off.
        xr = jnp.pad(xr, ((0, R_pad - R), (0, 0)))
    grid = (R_pad // rows_tile,)

    # Pass 1: per-lane sum and sum of squares (f32 accumulators).
    sums, sqs = pl.pallas_call(
        _bn_stats_kernel,
        out_shape=(jax.ShapeDtypeStruct((1, LANE), jnp.float32),
                   jax.ShapeDtypeStruct((1, LANE), jnp.float32)),
        grid=grid,
        in_specs=[pl.BlockSpec((rows_tile, LANE), lambda i: (i, 0))],
        out_specs=(pl.BlockSpec((1, LANE), lambda i: (0, 0)),
                   pl.BlockSpec((1, LANE), lambda i: (0, 0))),
        compiler_params=pltpu.CompilerParams(
            dimension_semantics=("arbitrary",)),
        cost_estimate=pl.CostEstimate(
            flops=3 * R_pad * LANE, transcendentals=0,
            bytes_accessed=R_pad * LANE * itemsize + 2 * LANE * 4),
    )(xr)

    # Finalize on tiny (C,) vectors in plain JAX: fold per-lane partials back
    # to per-channel, then build fused scale/bias once (not per grid step).
    sum_c = sums.reshape(F, C).sum(axis=0)
    sq_c = sqs.reshape(F, C).sum(axis=0)
    mean = sum_c / N
    var = jnp.maximum(sq_c / N - mean * mean, 0.0)      # biased variance
    scale = gamma.astype(jnp.float32) * jax.lax.rsqrt(var + EPS)
    bias = beta.astype(jnp.float32) - mean * scale
    scale_lane = jnp.tile(scale, F).reshape(1, LANE)
    bias_lane = jnp.tile(bias, F).reshape(1, LANE)

    # Pass 2: stream tiles and apply y = x * scale + bias (lane-dense output).
    out = pl.pallas_call(
        _bn_apply_kernel,
        out_shape=jax.ShapeDtypeStruct((R_pad, LANE), x.dtype),
        grid=grid,
        in_specs=[
            pl.BlockSpec((rows_tile, LANE), lambda i: (i, 0)),
            pl.BlockSpec((1, LANE), lambda i: (0, 0)),
            pl.BlockSpec((1, LANE), lambda i: (0, 0)),
        ],
        out_specs=pl.BlockSpec((rows_tile, LANE), lambda i: (i, 0)),
        compiler_params=pltpu.CompilerParams(
            dimension_semantics=("parallel",)),   # v7x: shard rows over 2 TCs
        cost_estimate=pl.CostEstimate(
            flops=2 * R_pad * LANE, transcendentals=0,
            bytes_accessed=2 * R_pad * LANE * itemsize + 2 * LANE * 4),
    )(xr, scale_lane, bias_lane)

    return out[:R].reshape(N, C).reshape(B, L, C)


# --------------------------------------------------------------------------
# Reference + tests
# --------------------------------------------------------------------------
def _reference(x, gamma, beta):
    B, L, C = x.shape
    xf = x.reshape(B * L, C).astype(jnp.float32)
    mean = xf.mean(axis=0, keepdims=True)
    var = ((xf - mean) ** 2).mean(axis=0, keepdims=True)
    y = (xf - mean) / jnp.sqrt(var + EPS) * gamma.astype(jnp.float32) \
        + beta.astype(jnp.float32)
    return y.reshape(B, L, C).astype(x.dtype)


if __name__ == "__main__":
    key = jax.random.PRNGKey(0)

    # Primary small test, matching the module (B, L, C) with default affine
    # init (gamma=1, beta=0): takes the single-block fast path.
    B, L, C = 2, 8, 4
    x = jax.random.normal(key, (B, L, C), dtype=jnp.float32)
    gamma = jnp.ones((C,), dtype=jnp.float32)
    beta = jnp.zeros((C,), dtype=jnp.float32)
    y = batchnorm1d(x, gamma, beta)
    jax.block_until_ready(y)
    assert jnp.allclose(y, _reference(x, gamma, beta), atol=1e-4, rtol=1e-4)

    # Tiled streaming path, C already lane-dense (multiple of 128).
    k1, k2 = jax.random.split(jax.random.PRNGKey(1))
    B2, L2, C2 = 2, 2048, 128
    x2 = jax.random.normal(k1, (B2, L2, C2), dtype=jnp.float32)
    g2 = 1.0 + 0.1 * jax.random.normal(k2, (C2,), dtype=jnp.float32)
    b2 = 0.1 * jax.random.normal(jax.random.PRNGKey(3), (C2,), dtype=jnp.float32)
    y2 = batchnorm1d(x2, g2, b2, force_tiled=True)
    jax.block_until_ready(y2)
    assert jnp.allclose(y2, _reference(x2, g2, b2), atol=1e-4, rtol=1e-4)

    # Tiled path with small C folded into the lane axis (lane-dense stores).
    B3, L3, C3 = 2, 4096, 4
    x3 = jax.random.normal(jax.random.PRNGKey(4), (B3, L3, C3), dtype=jnp.float32)
    g3 = jnp.array([1.0, 0.5, 2.0, 1.5], dtype=jnp.float32)
    b3 = jnp.array([0.0, 0.25, -0.5, 1.0], dtype=jnp.float32)
    y3 = batchnorm1d(x3, g3, b3, force_tiled=True)
    jax.block_until_ready(y3)
    assert jnp.allclose(y3, _reference(x3, g3, b3), atol=1e-4, rtol=1e-4)

    # Tiled fallback path with a ragged row count (exercises zero-padding).
    B4, L4, C4 = 2, 1000, 4
    x4 = jax.random.normal(jax.random.PRNGKey(5), (B4, L4, C4), dtype=jnp.float32)
    g4 = jnp.ones((C4,), jnp.float32)
    b4 = jnp.zeros((C4,), jnp.float32)
    y4 = batchnorm1d(x4, g4, b4, force_tiled=True)
    jax.block_until_ready(y4)
    assert jnp.allclose(y4, _reference(x4, g4, b4), atol=1e-4, rtol=1e-4)

    print("KERNEL_OK")
</pallas_src>

<mosaic_0001>
module attributes {stable_mosaic.version = 11 : i64} {
  func.func @_bn_single_block_kernel(%arg0: i32, %arg1: memref<16x4xf32, #tpu.memory_space<vmem>>, %arg2: memref<1x4xf32, #tpu.memory_space<vmem>>, %arg3: memref<1x4xf32, #tpu.memory_space<vmem>>, %arg4: memref<16x4xf32, #tpu.memory_space<vmem>>) attributes {dimension_semantics = [#tpu.dimension_semantics<arbitrary>], iteration_bounds = array<i64: 1>, scalar_prefetch = 0 : i64, scratch_operands = 0 : i64, tpu.core_type = #tpu.core_type<tc>, window_params = [{pipeline_mode = #tpu.pipeline_mode<synchronous>, transform_indices = @transform_0, window_bounds = array<i64: 16, 4>}, {pipeline_mode = #tpu.pipeline_mode<synchronous>, transform_indices = @transform_1, window_bounds = array<i64: 1, 4>}, {pipeline_mode = #tpu.pipeline_mode<synchronous>, transform_indices = @transform_2, window_bounds = array<i64: 1, 4>}, {pipeline_mode = #tpu.pipeline_mode<synchronous>, transform_indices = @transform_3, window_bounds = array<i64: 16, 4>}]} {
    %c0 = arith.constant 0 : index
    %c0_0 = arith.constant 0 : index
    %0 = vector.load %arg1[%c0, %c0_0] : memref<16x4xf32, #tpu.memory_space<vmem>>, vector<16x4xf32>
    %cst = arith.constant dense<0.000000e+00> : vector<4xf32>
    %1 = vector.multi_reduction <add>, %0, %cst [0] : vector<16x4xf32> to vector<4xf32>
    %2 = vector.shape_cast %1 : vector<4xf32> to vector<1x4xf32>
    %cst_1 = arith.constant 6.250000e-02 : f32
    %3 = vector.broadcast %cst_1 : f32 to vector<1x4xf32>
    %4 = arith.mulf %2, %3 : vector<1x4xf32>
    %5 = vector.broadcast %4 : vector<1x4xf32> to vector<16x4xf32>
    %6 = arith.subf %0, %5 : vector<16x4xf32>
    %7 = arith.mulf %6, %6 : vector<16x4xf32>
    %cst_2 = arith.constant dense<0.000000e+00> : vector<4xf32>
    %8 = vector.multi_reduction <add>, %7, %cst_2 [0] : vector<16x4xf32> to vector<4xf32>
    %9 = vector.shape_cast %8 : vector<4xf32> to vector<1x4xf32>
    %cst_3 = arith.constant 6.250000e-02 : f32
    %10 = vector.broadcast %cst_3 : f32 to vector<1x4xf32>
    %11 = arith.mulf %9, %10 : vector<1x4xf32>
    %c0_4 = arith.constant 0 : index
    %c0_5 = arith.constant 0 : index
    %12 = vector.load %arg2[%c0_4, %c0_5] : memref<1x4xf32, #tpu.memory_space<vmem>>, vector<1x4xf32>
    %cst_6 = arith.constant 9.99999974E-6 : f32
    %13 = vector.broadcast %cst_6 : f32 to vector<1x4xf32>
    %14 = arith.addf %11, %13 : vector<1x4xf32>
    %15 = math.rsqrt %14 : vector<1x4xf32>
    %16 = arith.mulf %12, %15 : vector<1x4xf32>
    %c0_7 = arith.constant 0 : index
    %c0_8 = arith.constant 0 : index
    %17 = vector.load %arg3[%c0_7, %c0_8] : memref<1x4xf32, #tpu.memory_space<vmem>>, vector<1x4xf32>
    %18 = arith.mulf %4, %16 : vector<1x4xf32>
    %19 = arith.subf %17, %18 : vector<1x4xf32>
    %20 = vector.broadcast %16 : vector<1x4xf32> to vector<16x4xf32>
    %21 = arith.mulf %0, %20 : vector<16x4xf32>
    %22 = vector.broadcast %19 : vector<1x4xf32> to vector<16x4xf32>
    %23 = arith.addf %21, %22 : vector<16x4xf32>
    %c0_9 = arith.constant 0 : index
    %c0_10 = arith.constant 0 : index
    %24 = vector.load %arg4[%c0_9, %c0_10] : memref<16x4xf32, #tpu.memory_space<vmem>>, vector<16x4xf32>
    tpu.vector_store %arg4[%c0_9, %c0_10], %23 {strides = array<i32>} : memref<16x4xf32, #tpu.memory_space<vmem>>, vector<16x4xf32>,
    return
  }
  func.func @transform_0(%arg0: i32) -> (i32, i32) {
    %c0_i32 = arith.constant 0 : i32
    %c0_i32_0 = arith.constant 0 : i32
    %c0_i32_1 = arith.constant 0 : i32
    return %c0_i32, %c0_i32_0 : i32, i32
  }
  func.func @transform_1(%arg0: i32) -> (i32, i32) {
    %c0_i32 = arith.constant 0 : i32
    %c0_i32_0 = arith.constant 0 : i32
    %c0_i32_1 = arith.constant 0 : i32
    return %c0_i32, %c0_i32_0 : i32, i32
  }
  func.func @transform_2(%arg0: i32) -> (i32, i32) {
    %c0_i32 = arith.constant 0 : i32
    %c0_i32_0 = arith.constant 0 : i32
    %c0_i32_1 = arith.constant 0 : i32
    return %c0_i32, %c0_i32_0 : i32, i32
  }
  func.func @transform_3(%arg0: i32) -> (i32, i32) {
    %c0_i32 = arith.constant 0 : i32
    %c0_i32_0 = arith.constant 0 : i32
    %c0_i32_1 = arith.constant 0 : i32
    return %c0_i32, %c0_i32_0 : i32, i32
  }
}

</mosaic_0001>

<bundles_post_ra>
// kernel: tpu_custom_call.1
= control target key start
LH: loop header
LB: loop body
LE: loop exit
PB: predicated region body
PF: predicated region fallthrough
CT: control target
= control target key end

     0   :  { %vm16_vm0 = vcmask 31744   ;;  %s119_s0 = inlined_call_operand.vmem [shape: f32[16,4], index: 0, kind: input, shape index: {}]   ;;  %s120_s1 = inlined_call_operand.vmem [shape: f32[1,4], index: 1, kind: input, shape index: {}]   ;;  %s121_s2 = inlined_call_operand.vmem [shape: f32[1,4], index: 2, kind: input, shape index: {}]   ;;  %s122_s3 = inlined_call_operand.vmem [shape: f32[16,4], index: 3, kind: output, shape index: {}]  }
   0x1   :  { %v14_v0 = vld [vmem:[%s119_s0] sm:$0xff]  ;;  %v15_v1 = vld [vmem:[%s119_s0 + $0x8] sm:$0xff] }
   0x2   :  { %v17_v2 = vsel %vm16_vm0, %v14_v0, 0.0  ;;  %v18_v3 = vsel %vm16_vm0, %v15_v1, 0.0  ;;  %v41_v32 = vld [vmem:[%s120_s1] sm:$0x1] }
   0x3   :  { %v19_v4 = vadd.f32 %v18_v3, %v17_v2  ;;  %v54_v36 = vld [vmem:[%s121_s2] sm:$0x1] }
   0x5   :  { %v20_v5 = vrot.slane %v19_v4, 4 }
   0x7   :  { %v21_v6 = vadd.f32 %v20_v5, %v19_v4 }
   0x9   :  { %v22_v7 = vrot.slane %v21_v6, 2 }
   0xb   :  { %v23_v8 = vadd.f32 %v22_v7, %v21_v6 }
   0xd   :  { %v24_v9 = vrot.slane %v23_v8, 1 }
   0xf   :  { %v25_v10 = vadd.f32 %v24_v9, %v23_v8 }
  0x11   :  { %v26_v11 = vmul.f32 0.0625, %v25_v10 }
  0x13   :  { %v27_v12 = vsub.f32 %v14_v0, %v26_v11  ;;  %v28_v13 = vsub.f32 %v15_v1, %v26_v11 }
  0x15   :  { %v29_v14 = vmul.f32 %v27_v12, %v27_v12  ;;  %v30_v15 = vmul.f32 %v28_v13, %v28_v13 }
  0x17   :  { %v31_v16 = vsel %vm16_vm0, %v29_v14, 0.0  ;;  %v32_v17 = vsel %vm16_vm0, %v30_v15, 0.0 }
  0x18   :  { %v33_v18 = vadd.f32 %v32_v17, %v31_v16 }
  0x1a   :  { %v34_v19 = vrot.slane %v33_v18, 4 }
  0x1c   :  { %v35_v20 = vadd.f32 %v34_v19, %v33_v18 }
  0x1e   :  { %v36_v21 = vrot.slane %v35_v20, 2 }
  0x20   :  { %v37_v22 = vadd.f32 %v36_v21, %v35_v20 }
  0x22   :  { %v38_v23 = vrot.slane %v37_v22, 1 }
  0x24   :  { %v39_v24 = vadd.f32 %v38_v23, %v37_v22 }
  0x26   :  { %v40_v25 = vmul.f32 0.0625, %v39_v24 }
  0x28   :  { %v42_v26 = vadd.f32 1e-05, %v40_v25 }
  0x2a   :  { %73 = vrsqrt.f32 %v42_v26  ;;  %vm49_vm1 = vweird.f32 %v42_v26 }
  0x30   :  { %v74_v27 = vpop.eup %73 }
  0x31   :  { %v44_v28 = vmul.f32 %v74_v27, %v42_v26  ;;  %vm50_vm2 = vweird.f32 %v74_v27 }
  0x32   :  { %vm51_vm3 = vmor %vm49_vm1, %vm50_vm2 }
  0x33   :  { %v45_v29 = vmul.f32 %v74_v27, %v44_v28 }
  0x35   :  { %v46_v30 = vmul.f32 0.5, %v45_v29 }
  0x37   :  { %v47_v31 = vsub.f32 1.5, %v46_v30 }
  0x39   :  { %v48_v33 = vmul.f32 %v74_v27, %v47_v31 }
  0x3b   :  { %v52_v34 = vsel %vm51_vm3, %v74_v27, %v48_v33 }
  0x3c   :  { %v53_v35 = vmul.f32 %v52_v34, %v41_v32 }
  0x3e   :  { %v55_v37 = vmul.f32 %v53_v35, %v26_v11  ;;  %v58_v38 = vperm.slane %v53_v35, 0 }
  0x40   :  { %v56_v39 = vsub.f32 %v54_v36, %v55_v37  ;;  %v60_v40 = vmul.f32 %v58_v38, %v14_v0  ;;  %v61_v41 = vmul.f32 %v58_v38, %v15_v1 }
  0x42   :  { %v63_v42 = vperm.slane %v56_v39, 0 }
  0x44   :  { %v65_v43 = vadd.f32 %v63_v42, %v60_v40  ;;  %v66_v44 = vadd.f32 %v63_v42, %v61_v41 }
  0x46   :  { %67 = vst.msk [vmem:[%s122_s3] sm:$0xff] %vm16_vm0, %v65_v43 }
  0x47   :  { %68 = vst.msk [vmem:[%s122_s3 + $0x8] sm:$0xff] %vm16_vm0, %v66_v44 }

</bundles_post_ra>
